<compile_context>
chip_gen: v6e
topology: v6e:2x2x1
jax: 0.10.0
libtpu: 0.0.40
codegen_flags: <defaults>
</compile_context>

<pallas_src>
import math

import jax
import jax.numpy as jnp
from jax.experimental import pallas as pl
from jax.experimental.pallas import tpu as pltpu


# ----------------------------------------------------------------------------
# Pallas kernel: hoisted input projection + unrolled LSTM recurrence
#                + fused residual/LayerNorm, single lane-dense store.
# ----------------------------------------------------------------------------
def san_lstm_kernel(x_ref,      # (T*B, H)  time-major, flattened input
                    wih_ref,    # (H, 4H)   W_ih^T, g-gate columns pre-scaled x2
                    whh_ref,    # (H, 4H)   W_hh^T, g-gate columns pre-scaled x2
                    b_ref,      # (1, 4H)   (b_ih + b_hh), g-gate part pre-scaled x2
                    gamma_ref,  # (1, H)    LayerNorm weight
                    beta_ref,   # (1, H)    LayerNorm bias
                    out_ref):   # (B, T*H)  lane-dense output
    TB, H = x_ref.shape
    B = out_ref.shape[0]
    T = TB // B
    H4 = 4 * H

    x_all = x_ref[...]                                    # (T*B, H)
    w_hh = whh_ref[...]                                   # (H, 4H)
    gamma = gamma_ref[...]                                # (1, H)
    beta = beta_ref[...]                                  # (1, H)

    # --- Hoisted input projection: one big matmul, bias folded in. -----------
    xg = jnp.dot(x_all, wih_ref[...],
                 preferred_element_type=jnp.float32) + b_ref[...]   # (T*B, 4H)

    # --- Whole-vreg activation fixup (hoisted). ------------------------------
    # g-gate pre-activations arrive already doubled (weights pre-scaled), so
    # sigmoid(gates) on the g lanes is sigmoid(2z); 2*sigmoid(2z)-1 == tanh(z).
    lane = jax.lax.broadcasted_iota(jnp.int32, (B, H4), 1)
    is_g = jnp.logical_and(lane >= 2 * H, lane < 3 * H)
    post_mul = jnp.where(is_g, 2.0, 1.0).astype(jnp.float32)
    post_add = jnp.where(is_g, -1.0, 0.0).astype(jnp.float32)

    h = jnp.zeros((B, H), jnp.float32)
    c = jnp.zeros((B, H), jnp.float32)
    ys = []
    # Fully unrolled recurrence: only h @ W_hh remains on the serial chain.
    for t in range(T):
        x_t = x_all[t * B:(t + 1) * B, :]                 # (B, H) static slice
        gates = xg[t * B:(t + 1) * B, :] + jnp.dot(
            h, w_hh, preferred_element_type=jnp.float32)  # (B, 4H)
        act = jax.nn.sigmoid(gates) * post_mul + post_add # i,f,o: sigmoid; g: tanh
        i_g = act[:, 0 * H:1 * H]
        f_g = act[:, 1 * H:2 * H]
        g_g = act[:, 2 * H:3 * H]
        o_g = act[:, 3 * H:4 * H]
        c = f_g * c + i_g * g_g
        h = o_g * jnp.tanh(c)

        # Fused residual + LayerNorm (eps=1e-12, biased variance, as in torch).
        y = x_t + h
        mean = jnp.mean(y, axis=-1, keepdims=True)
        var = jnp.mean((y - mean) ** 2, axis=-1, keepdims=True)
        y = (y - mean) * jax.lax.rsqrt(var + 1e-12)
        ys.append(y * gamma + beta)                       # (B, H)

    # Single lane-dense store: (B, T*H), T*H is a multiple of 128.
    out_ref[...] = jnp.concatenate(ys, axis=1)


# ----------------------------------------------------------------------------
# Wrapper (glue: param packing / gate pre-scaling, layout plumbing)
# ----------------------------------------------------------------------------
@jax.jit
def san_layer_forward(x, attention_mask, params):
    # x: (B, T, H) batch_first, same as the PyTorch module.
    # attention_mask is accepted but unused (matches the reference forward).
    del attention_mask
    B, T, H = x.shape

    # Pre-scale the g-gate (cell candidate) rows by 2 so the kernel can use a
    # single whole-vreg sigmoid and recover tanh via 2*sigmoid(2z)-1.
    gate_scale = jnp.concatenate([
        jnp.ones((2 * H,), jnp.float32),
        jnp.full((H,), 2.0, jnp.float32),
        jnp.ones((H,), jnp.float32),
    ])
    w_ih_t = (params["w_ih"] * gate_scale[:, None]).T            # (H, 4H)
    w_hh_t = (params["w_hh"] * gate_scale[:, None]).T            # (H, 4H)
    b = ((params["b_ih"] + params["b_hh"]) * gate_scale).reshape(1, 4 * H)
    gamma = params["ln_gamma"].reshape(1, H)
    beta = params["ln_beta"].reshape(1, H)

    # Time-major, flattened to (T*B, H) so the hoisted projection is one matmul.
    x_2d = jnp.transpose(x, (1, 0, 2)).reshape(T * B, H)

    out_flat = pl.pallas_call(
        san_lstm_kernel,
        out_shape=jax.ShapeDtypeStruct((B, T * H), jnp.float32),
        in_specs=[pl.BlockSpec(memory_space=pltpu.MemorySpace.VMEM)] * 6,
        out_specs=pl.BlockSpec(memory_space=pltpu.MemorySpace.VMEM),
    )(x_2d, w_ih_t, w_hh_t, b, gamma, beta)

    # (B, T*H) -> (B, T, H): each batch row holds its sequence contiguously.
    return out_flat.reshape(B, T, H)


# ----------------------------------------------------------------------------
# Pure-JAX reference (for correctness check)
# ----------------------------------------------------------------------------
def san_layer_ref(x, params):
    B, T, H = x.shape

    def step(carry, x_t):
        h, c = carry
        gates = (x_t @ params["w_ih"].T + h @ params["w_hh"].T
                 + params["b_ih"] + params["b_hh"])
        i_g, f_g, g_g, o_g = jnp.split(gates, 4, axis=-1)
        i_g, f_g, o_g = jax.nn.sigmoid(i_g), jax.nn.sigmoid(f_g), jax.nn.sigmoid(o_g)
        g_g = jnp.tanh(g_g)
        c = f_g * c + i_g * g_g
        h = o_g * jnp.tanh(c)
        return (h, c), h

    h0 = jnp.zeros((B, H), jnp.float32)
    c0 = jnp.zeros((B, H), jnp.float32)
    _, ys = jax.lax.scan(step, (h0, c0), jnp.transpose(x, (1, 0, 2)))
    tmp = jnp.transpose(ys, (1, 0, 2))

    y = x + tmp
    mean = jnp.mean(y, axis=-1, keepdims=True)
    var = jnp.mean((y - mean) ** 2, axis=-1, keepdims=True)
    y_norm = (y - mean) * jax.lax.rsqrt(var + 1e-12)
    return y_norm * params["ln_gamma"] + params["ln_beta"]


# ----------------------------------------------------------------------------
# Main
# ----------------------------------------------------------------------------
if __name__ == "__main__":
    # Configuration: num_hid=32, rnn_type='LSTM', bidirect=False, dropout=0.0
    B, T, H = 2, 8, 32

    key = jax.random.PRNGKey(0)
    k_x, k1, k2, k3, k4 = jax.random.split(key, 5)

    bound = 1.0 / math.sqrt(H)   # PyTorch RNN default init range
    params = {
        "w_ih": jax.random.uniform(k1, (4 * H, H), jnp.float32, -bound, bound),
        "w_hh": jax.random.uniform(k2, (4 * H, H), jnp.float32, -bound, bound),
        "b_ih": jax.random.uniform(k3, (4 * H,), jnp.float32, -bound, bound),
        "b_hh": jax.random.uniform(k4, (4 * H,), jnp.float32, -bound, bound),
        "ln_gamma": jnp.ones((H,), jnp.float32),
        "ln_beta": jnp.zeros((H,), jnp.float32),
    }

    x = jax.random.normal(k_x, (B, T, H), jnp.float32)
    attention_mask = jnp.ones((B, T), jnp.float32)   # unused, as in the PyTorch module

    out = jax.block_until_ready(san_layer_forward(x, attention_mask, params))

    ref = san_layer_ref(x, params)
    # Slightly looser tolerance: tanh on the g-gate is computed as
    # 2*sigmoid(2z)-1 inside the kernel (whole-vreg EUP path).
    if not jnp.allclose(out, ref, atol=1e-4, rtol=1e-4):
        raise AssertionError("Pallas kernel output does not match reference")

    # TODO(synk): bidirectional (ndirections > 1) branch and the GRU cell variant
    # are not exercised in this synthetic config; only the LSTM/unidirectional
    # path of SanLayer.forward is implemented.
    print("KERNEL_OK")
</pallas_src>

<mosaic_0001>
module attributes {stable_mosaic.version = 11 : i64} {
  func.func @san_lstm_kernel(%arg0: memref<16x32xf32, #tpu.memory_space<vmem>>, %arg1: memref<32x128xf32, #tpu.memory_space<vmem>>, %arg2: memref<32x128xf32, #tpu.memory_space<vmem>>, %arg3: memref<1x128xf32, #tpu.memory_space<vmem>>, %arg4: memref<1x32xf32, #tpu.memory_space<vmem>>, %arg5: memref<1x32xf32, #tpu.memory_space<vmem>>, %arg6: memref<2x256xf32, #tpu.memory_space<vmem>>) attributes {dimension_semantics = [], scalar_prefetch = 0 : i64, scratch_operands = 0 : i64, tpu.core_type = #tpu.core_type<tc>} {
    %c0 = arith.constant 0 : index
    %c0_0 = arith.constant 0 : index
    %0 = vector.load %arg0[%c0, %c0_0] : memref<16x32xf32, #tpu.memory_space<vmem>>, vector<16x32xf32>
    %c0_1 = arith.constant 0 : index
    %c0_2 = arith.constant 0 : index
    %1 = vector.load %arg2[%c0_1, %c0_2] : memref<32x128xf32, #tpu.memory_space<vmem>>, vector<32x128xf32>
    %c0_3 = arith.constant 0 : index
    %c0_4 = arith.constant 0 : index
    %2 = vector.load %arg4[%c0_3, %c0_4] : memref<1x32xf32, #tpu.memory_space<vmem>>, vector<1x32xf32>
    %c0_5 = arith.constant 0 : index
    %c0_6 = arith.constant 0 : index
    %3 = vector.load %arg5[%c0_5, %c0_6] : memref<1x32xf32, #tpu.memory_space<vmem>>, vector<1x32xf32>
    %c0_7 = arith.constant 0 : index
    %c0_8 = arith.constant 0 : index
    %4 = vector.load %arg1[%c0_7, %c0_8] : memref<32x128xf32, #tpu.memory_space<vmem>>, vector<32x128xf32>
    %cst = arith.constant dense<0.000000e+00> : vector<16x128xf32>
    %5 = tpu.matmul %0, %4, %cst {dimension_numbers = #tpu.dot_dimension_numbers<[1], [0], [0], [1], [0, 0, 1, 1], [], []>} : vector<16x32xf32>, vector<32x128xf32>, vector<16x128xf32> -> vector<16x128xf32>
    %c0_9 = arith.constant 0 : index
    %c0_10 = arith.constant 0 : index
    %6 = vector.load %arg3[%c0_9, %c0_10] : memref<1x128xf32, #tpu.memory_space<vmem>>, vector<1x128xf32>
    %7 = vector.broadcast %6 : vector<1x128xf32> to vector<16x128xf32>
    %8 = arith.addf %5, %7 : vector<16x128xf32>
    %9 = tpu.iota {dimensions = array<i32: 1>} : vector<2x128xi32>
    %c64_i32 = arith.constant 64 : i32
    %10 = vector.broadcast %c64_i32 : i32 to vector<2x128xi32>
    %11 = arith.cmpi sge, %9, %10 : vector<2x128xi32>
    %c96_i32 = arith.constant 96 : i32
    %12 = vector.broadcast %c96_i32 : i32 to vector<2x128xi32>
    %13 = arith.cmpi slt, %9, %12 : vector<2x128xi32>
    %14 = arith.andi %11, %13 : vector<2x128xi1>
    %cst_11 = arith.constant 2.000000e+00 : f32
    %cst_12 = arith.constant 1.000000e+00 : f32
    %15 = vector.broadcast %cst_11 : f32 to vector<2x128xf32>
    %16 = vector.broadcast %cst_12 : f32 to vector<2x128xf32>
    %17 = arith.select %14, %15, %16 : vector<2x128xi1>, vector<2x128xf32>
    %cst_13 = arith.constant -1.000000e+00 : f32
    %cst_14 = arith.constant 0.000000e+00 : f32
    %18 = vector.broadcast %cst_13 : f32 to vector<2x128xf32>
    %19 = vector.broadcast %cst_14 : f32 to vector<2x128xf32>
    %20 = arith.select %14, %18, %19 : vector<2x128xi1>, vector<2x128xf32>
    %cst_15 = arith.constant 0.000000e+00 : f32
    %21 = vector.broadcast %cst_15 : f32 to vector<2x32xf32>
    %cst_16 = arith.constant 0.000000e+00 : f32
    %22 = vector.broadcast %cst_16 : f32 to vector<2x32xf32>
    %23 = vector.extract_strided_slice %0 {offsets = [0, 0], sizes = [2, 32], strides = [1, 1]} : vector<16x32xf32> to vector<2x32xf32>
    %24 = vector.extract_strided_slice %8 {offsets = [0, 0], sizes = [2, 128], strides = [1, 1]} : vector<16x128xf32> to vector<2x128xf32>
    %cst_17 = arith.constant dense<0.000000e+00> : vector<2x128xf32>
    %25 = tpu.matmul %21, %1, %cst_17 {dimension_numbers = #tpu.dot_dimension_numbers<[1], [0], [0], [1], [0, 0, 1, 1], [], []>} : vector<2x32xf32>, vector<32x128xf32>, vector<2x128xf32> -> vector<2x128xf32>
    %26 = arith.addf %24, %25 : vector<2x128xf32>
    %27 = arith.negf %26 : vector<2x128xf32>
    %28 = math.exp %27 : vector<2x128xf32>
    %cst_18 = arith.constant 1.000000e+00 : f32
    %29 = vector.broadcast %cst_18 : f32 to vector<2x128xf32>
    %30 = arith.addf %29, %28 : vector<2x128xf32>
    %31 = arith.divf %29, %30 : vector<2x128xf32>
    %32 = arith.mulf %31, %17 : vector<2x128xf32>
    %33 = arith.addf %32, %20 : vector<2x128xf32>
    %34 = vector.extract_strided_slice %33 {offsets = [0, 0], sizes = [2, 32], strides = [1, 1]} : vector<2x128xf32> to vector<2x32xf32>
    %35 = vector.extract_strided_slice %33 {offsets = [0, 32], sizes = [2, 32], strides = [1, 1]} : vector<2x128xf32> to vector<2x32xf32>
    %36 = vector.extract_strided_slice %33 {offsets = [0, 64], sizes = [2, 32], strides = [1, 1]} : vector<2x128xf32> to vector<2x32xf32>
    %37 = vector.extract_strided_slice %33 {offsets = [0, 96], sizes = [2, 32], strides = [1, 1]} : vector<2x128xf32> to vector<2x32xf32>
    %38 = arith.mulf %35, %22 : vector<2x32xf32>
    %39 = arith.mulf %34, %36 : vector<2x32xf32>
    %40 = arith.addf %38, %39 : vector<2x32xf32>
    %41 = math.tanh %40 : vector<2x32xf32>
    %42 = arith.mulf %37, %41 : vector<2x32xf32>
    %43 = arith.addf %23, %42 : vector<2x32xf32>
    %cst_19 = arith.constant dense<0.000000e+00> : vector<2xf32>
    %44 = vector.multi_reduction <add>, %43, %cst_19 [1] : vector<2x32xf32> to vector<2xf32>
    %45 = vector.shape_cast %44 : vector<2xf32> to vector<2x1xf32>
    %cst_20 = arith.constant 3.200000e+01 : f32
    %46 = vector.broadcast %cst_20 : f32 to vector<2x1xf32>
    %47 = arith.divf %45, %46 : vector<2x1xf32>
    %48 = vector.broadcast %47 : vector<2x1xf32> to vector<2x32xf32>
    %49 = arith.subf %43, %48 : vector<2x32xf32>
    %50 = arith.mulf %49, %49 : vector<2x32xf32>
    %cst_21 = arith.constant dense<0.000000e+00> : vector<2xf32>
    %51 = vector.multi_reduction <add>, %50, %cst_21 [1] : vector<2x32xf32> to vector<2xf32>
    %52 = vector.shape_cast %51 : vector<2xf32> to vector<2x1xf32>
    %cst_22 = arith.constant 3.200000e+01 : f32
    %53 = vector.broadcast %cst_22 : f32 to vector<2x1xf32>
    %54 = arith.divf %52, %53 : vector<2x1xf32>
    %55 = vector.broadcast %47 : vector<2x1xf32> to vector<2x32xf32>
    %56 = arith.subf %43, %55 : vector<2x32xf32>
    %cst_23 = arith.constant 9.99999996E-13 : f32
    %57 = vector.broadcast %cst_23 : f32 to vector<2x1xf32>
    %58 = arith.addf %54, %57 : vector<2x1xf32>
    %59 = math.rsqrt %58 : vector<2x1xf32>
    %60 = vector.broadcast %59 : vector<2x1xf32> to vector<2x32xf32>
    %61 = arith.mulf %56, %60 : vector<2x32xf32>
    %62 = vector.broadcast %2 : vector<1x32xf32> to vector<2x32xf32>
    %63 = arith.mulf %61, %62 : vector<2x32xf32>
    %64 = vector.broadcast %3 : vector<1x32xf32> to vector<2x32xf32>
    %65 = arith.addf %63, %64 : vector<2x32xf32>
    %66 = vector.extract_strided_slice %0 {offsets = [2, 0], sizes = [2, 32], strides = [1, 1]} : vector<16x32xf32> to vector<2x32xf32>
    %67 = vector.extract_strided_slice %8 {offsets = [2, 0], sizes = [2, 128], strides = [1, 1]} : vector<16x128xf32> to vector<2x128xf32>
    %cst_24 = arith.constant dense<0.000000e+00> : vector<2x128xf32>
    %68 = tpu.matmul %42, %1, %cst_24 {dimension_numbers = #tpu.dot_dimension_numbers<[1], [0], [0], [1], [0, 0, 1, 1], [], []>} : vector<2x32xf32>, vector<32x128xf32>, vector<2x128xf32> -> vector<2x128xf32>
    %69 = arith.addf %67, %68 : vector<2x128xf32>
    %70 = arith.negf %69 : vector<2x128xf32>
    %71 = math.exp %70 : vector<2x128xf32>
    %cst_25 = arith.constant 1.000000e+00 : f32
    %72 = vector.broadcast %cst_25 : f32 to vector<2x128xf32>
    %73 = arith.addf %72, %71 : vector<2x128xf32>
    %74 = arith.divf %72, %73 : vector<2x128xf32>
    %75 = arith.mulf %74, %17 : vector<2x128xf32>
    %76 = arith.addf %75, %20 : vector<2x128xf32>
    %77 = vector.extract_strided_slice %76 {offsets = [0, 0], sizes = [2, 32], strides = [1, 1]} : vector<2x128xf32> to vector<2x32xf32>
    %78 = vector.extract_strided_slice %76 {offsets = [0, 32], sizes = [2, 32], strides = [1, 1]} : vector<2x128xf32> to vector<2x32xf32>
    %79 = vector.extract_strided_slice %76 {offsets = [0, 64], sizes = [2, 32], strides = [1, 1]} : vector<2x128xf32> to vector<2x32xf32>
    %80 = vector.extract_strided_slice %76 {offsets = [0, 96], sizes = [2, 32], strides = [1, 1]} : vector<2x128xf32> to vector<2x32xf32>
    %81 = arith.mulf %78, %40 : vector<2x32xf32>
    %82 = arith.mulf %77, %79 : vector<2x32xf32>
    %83 = arith.addf %81, %82 : vector<2x32xf32>
    %84 = math.tanh %83 : vector<2x32xf32>
    %85 = arith.mulf %80, %84 : vector<2x32xf32>
    %86 = arith.addf %66, %85 : vector<2x32xf32>
    %cst_26 = arith.constant dense<0.000000e+00> : vector<2xf32>
    %87 = vector.multi_reduction <add>, %86, %cst_26 [1] : vector<2x32xf32> to vector<2xf32>
    %88 = vector.shape_cast %87 : vector<2xf32> to vector<2x1xf32>
    %cst_27 = arith.constant 3.200000e+01 : f32
    %89 = vector.broadcast %cst_27 : f32 to vector<2x1xf32>
    %90 = arith.divf %88, %89 : vector<2x1xf32>
    %91 = vector.broadcast %90 : vector<2x1xf32> to vector<2x32xf32>
    %92 = arith.subf %86, %91 : vector<2x32xf32>
    %93 = arith.mulf %92, %92 : vector<2x32xf32>
    %cst_28 = arith.constant dense<0.000000e+00> : vector<2xf32>
    %94 = vector.multi_reduction <add>, %93, %cst_28 [1] : vector<2x32xf32> to vector<2xf32>
    %95 = vector.shape_cast %94 : vector<2xf32> to vector<2x1xf32>
    %cst_29 = arith.constant 3.200000e+01 : f32
    %96 = vector.broadcast %cst_29 : f32 to vector<2x1xf32>
    %97 = arith.divf %95, %96 : vector<2x1xf32>
    %98 = vector.broadcast %90 : vector<2x1xf32> to vector<2x32xf32>
    %99 = arith.subf %86, %98 : vector<2x32xf32>
    %cst_30 = arith.constant 9.99999996E-13 : f32
    %100 = vector.broadcast %cst_30 : f32 to vector<2x1xf32>
    %101 = arith.addf %97, %100 : vector<2x1xf32>
    %102 = math.rsqrt %101 : vector<2x1xf32>
    %103 = vector.broadcast %102 : vector<2x1xf32> to vector<2x32xf32>
    %104 = arith.mulf %99, %103 : vector<2x32xf32>
    %105 = vector.broadcast %2 : vector<1x32xf32> to vector<2x32xf32>
    %106 = arith.mulf %104, %105 : vector<2x32xf32>
    %107 = vector.broadcast %3 : vector<1x32xf32> to vector<2x32xf32>
    %108 = arith.addf %106, %107 : vector<2x32xf32>
    %109 = vector.extract_strided_slice %0 {offsets = [4, 0], sizes = [2, 32], strides = [1, 1]} : vector<16x32xf32> to vector<2x32xf32>
    %110 = vector.extract_strided_slice %8 {offsets = [4, 0], sizes = [2, 128], strides = [1, 1]} : vector<16x128xf32> to vector<2x128xf32>
    %cst_31 = arith.constant dense<0.000000e+00> : vector<2x128xf32>
    %111 = tpu.matmul %85, %1, %cst_31 {dimension_numbers = #tpu.dot_dimension_numbers<[1], [0], [0], [1], [0, 0, 1, 1], [], []>} : vector<2x32xf32>, vector<32x128xf32>, vector<2x128xf32> -> vector<2x128xf32>
    %112 = arith.addf %110, %111 : vector<2x128xf32>
    %113 = arith.negf %112 : vector<2x128xf32>
    %114 = math.exp %113 : vector<2x128xf32>
    %cst_32 = arith.constant 1.000000e+00 : f32
    %115 = vector.broadcast %cst_32 : f32 to vector<2x128xf32>
    %116 = arith.addf %115, %114 : vector<2x128xf32>
    %117 = arith.divf %115, %116 : vector<2x128xf32>
    %118 = arith.mulf %117, %17 : vector<2x128xf32>
    %119 = arith.addf %118, %20 : vector<2x128xf32>
    %120 = vector.extract_strided_slice %119 {offsets = [0, 0], sizes = [2, 32], strides = [1, 1]} : vector<2x128xf32> to vector<2x32xf32>
    %121 = vector.extract_strided_slice %119 {offsets = [0, 32], sizes = [2, 32], strides = [1, 1]} : vector<2x128xf32> to vector<2x32xf32>
    %122 = vector.extract_strided_slice %119 {offsets = [0, 64], sizes = [2, 32], strides = [1, 1]} : vector<2x128xf32> to vector<2x32xf32>
    %123 = vector.extract_strided_slice %119 {offsets = [0, 96], sizes = [2, 32], strides = [1, 1]} : vector<2x128xf32> to vector<2x32xf32>
    %124 = arith.mulf %121, %83 : vector<2x32xf32>
    %125 = arith.mulf %120, %122 : vector<2x32xf32>
    %126 = arith.addf %124, %125 : vector<2x32xf32>
    %127 = math.tanh %126 : vector<2x32xf32>
    %128 = arith.mulf %123, %127 : vector<2x32xf32>
    %129 = arith.addf %109, %128 : vector<2x32xf32>
    %cst_33 = arith.constant dense<0.000000e+00> : vector<2xf32>
    %130 = vector.multi_reduction <add>, %129, %cst_33 [1] : vector<2x32xf32> to vector<2xf32>
    %131 = vector.shape_cast %130 : vector<2xf32> to vector<2x1xf32>
    %cst_34 = arith.constant 3.200000e+01 : f32
    %132 = vector.broadcast %cst_34 : f32 to vector<2x1xf32>
    %133 = arith.divf %131, %132 : vector<2x1xf32>
    %134 = vector.broadcast %133 : vector<2x1xf32> to vector<2x32xf32>
    %135 = arith.subf %129, %134 : vector<2x32xf32>
    %136 = arith.mulf %135, %135 : vector<2x32xf32>
    %cst_35 = arith.constant dense<0.000000e+00> : vector<2xf32>
    %137 = vector.multi_reduction <add>, %136, %cst_35 [1] : vector<2x32xf32> to vector<2xf32>
    %138 = vector.shape_cast %137 : vector<2xf32> to vector<2x1xf32>
    %cst_36 = arith.constant 3.200000e+01 : f32
    %139 = vector.broadcast %cst_36 : f32 to vector<2x1xf32>
    %140 = arith.divf %138, %139 : vector<2x1xf32>
    %141 = vector.broadcast %133 : vector<2x1xf32> to vector<2x32xf32>
    %142 = arith.subf %129, %141 : vector<2x32xf32>
    %cst_37 = arith.constant 9.99999996E-13 : f32
    %143 = vector.broadcast %cst_37 : f32 to vector<2x1xf32>
    %144 = arith.addf %140, %143 : vector<2x1xf32>
    %145 = math.rsqrt %144 : vector<2x1xf32>
    %146 = vector.broadcast %145 : vector<2x1xf32> to vector<2x32xf32>
    %147 = arith.mulf %142, %146 : vector<2x32xf32>
    %148 = vector.broadcast %2 : vector<1x32xf32> to vector<2x32xf32>
    %149 = arith.mulf %147, %148 : vector<2x32xf32>
    %150 = vector.broadcast %3 : vector<1x32xf32> to vector<2x32xf32>
    %151 = arith.addf %149, %150 : vector<2x32xf32>
    %152 = vector.extract_strided_slice %0 {offsets = [6, 0], sizes = [2, 32], strides = [1, 1]} : vector<16x32xf32> to vector<2x32xf32>
    %153 = vector.extract_strided_slice %8 {offsets = [6, 0], sizes = [2, 128], strides = [1, 1]} : vector<16x128xf32> to vector<2x128xf32>
    %cst_38 = arith.constant dense<0.000000e+00> : vector<2x128xf32>
    %154 = tpu.matmul %128, %1, %cst_38 {dimension_numbers = #tpu.dot_dimension_numbers<[1], [0], [0], [1], [0, 0, 1, 1], [], []>} : vector<2x32xf32>, vector<32x128xf32>, vector<2x128xf32> -> vector<2x128xf32>
    %155 = arith.addf %153, %154 : vector<2x128xf32>
    %156 = arith.negf %155 : vector<2x128xf32>
    %157 = math.exp %156 : vector<2x128xf32>
    %cst_39 = arith.constant 1.000000e+00 : f32
    %158 = vector.broadcast %cst_39 : f32 to vector<2x128xf32>
    %159 = arith.addf %158, %157 : vector<2x128xf32>
    %160 = arith.divf %158, %159 : vector<2x128xf32>
    %161 = arith.mulf %160, %17 : vector<2x128xf32>
    %162 = arith.addf %161, %20 : vector<2x128xf32>
    %163 = vector.extract_strided_slice %162 {offsets = [0, 0], sizes = [2, 32], strides = [1, 1]} : vector<2x128xf32> to vector<2x32xf32>
    %164 = vector.extract_strided_slice %162 {offsets = [0, 32], sizes = [2, 32], strides = [1, 1]} : vector<2x128xf32> to vector<2x32xf32>
    %165 = vector.extract_strided_slice %162 {offsets = [0, 64], sizes = [2, 32], strides = [1, 1]} : vector<2x128xf32> to vector<2x32xf32>
    %166 = vector.extract_strided_slice %162 {offsets = [0, 96], sizes = [2, 32], strides = [1, 1]} : vector<2x128xf32> to vector<2x32xf32>
    %167 = arith.mulf %164, %126 : vector<2x32xf32>
    %168 = arith.mulf %163, %165 : vector<2x32xf32>
    %169 = arith.addf %167, %168 : vector<2x32xf32>
    %170 = math.tanh %169 : vector<2x32xf32>
    %171 = arith.mulf %166, %170 : vector<2x32xf32>
    %172 = arith.addf %152, %171 : vector<2x32xf32>
    %cst_40 = arith.constant dense<0.000000e+00> : vector<2xf32>
    %173 = vector.multi_reduction <add>, %172, %cst_40 [1] : vector<2x32xf32> to vector<2xf32>
    %174 = vector.shape_cast %173 : vector<2xf32> to vector<2x1xf32>
    %cst_41 = arith.constant 3.200000e+01 : f32
    %175 = vector.broadcast %cst_41 : f32 to vector<2x1xf32>
    %176 = arith.divf %174, %175 : vector<2x1xf32>
    %177 = vector.broadcast %176 : vector<2x1xf32> to vector<2x32xf32>
    %178 = arith.subf %172, %177 : vector<2x32xf32>
    %179 = arith.mulf %178, %178 : vector<2x32xf32>
    %cst_42 = arith.constant dense<0.000000e+00> : vector<2xf32>
    %180 = vector.multi_reduction <add>, %179, %cst_42 [1] : vector<2x32xf32> to vector<2xf32>
    %181 = vector.shape_cast %180 : vector<2xf32> to vector<2x1xf32>
    %cst_43 = arith.constant 3.200000e+01 : f32
    %182 = vector.broadcast %cst_43 : f32 to vector<2x1xf32>
    %183 = arith.divf %181, %182 : vector<2x1xf32>
    %184 = vector.broadcast %176 : vector<2x1xf32> to vector<2x32xf32>
    %185 = arith.subf %172, %184 : vector<2x32xf32>
    %cst_44 = arith.constant 9.99999996E-13 : f32
    %186 = vector.broadcast %cst_44 : f32 to vector<2x1xf32>
    %187 = arith.addf %183, %186 : vector<2x1xf32>
    %188 = math.rsqrt %187 : vector<2x1xf32>
    %189 = vector.broadcast %188 : vector<2x1xf32> to vector<2x32xf32>
    %190 = arith.mulf %185, %189 : vector<2x32xf32>
    %191 = vector.broadcast %2 : vector<1x32xf32> to vector<2x32xf32>
    %192 = arith.mulf %190, %191 : vector<2x32xf32>
    %193 = vector.broadcast %3 : vector<1x32xf32> to vector<2x32xf32>
    %194 = arith.addf %192, %193 : vector<2x32xf32>
    %195 = vector.extract_strided_slice %0 {offsets = [8, 0], sizes = [2, 32], strides = [1, 1]} : vector<16x32xf32> to vector<2x32xf32>
    %196 = vector.extract_strided_slice %8 {offsets = [8, 0], sizes = [2, 128], strides = [1, 1]} : vector<16x128xf32> to vector<2x128xf32>
    %cst_45 = arith.constant dense<0.000000e+00> : vector<2x128xf32>
    %197 = tpu.matmul %171, %1, %cst_45 {dimension_numbers = #tpu.dot_dimension_numbers<[1], [0], [0], [1], [0, 0, 1, 1], [], []>} : vector<2x32xf32>, vector<32x128xf32>, vector<2x128xf32> -> vector<2x128xf32>
    %198 = arith.addf %196, %197 : vector<2x128xf32>
    %199 = arith.negf %198 : vector<2x128xf32>
    %200 = math.exp %199 : vector<2x128xf32>
    %cst_46 = arith.constant 1.000000e+00 : f32
    %201 = vector.broadcast %cst_46 : f32 to vector<2x128xf32>
    %202 = arith.addf %201, %200 : vector<2x128xf32>
    %203 = arith.divf %201, %202 : vector<2x128xf32>
    %204 = arith.mulf %203, %17 : vector<2x128xf32>
    %205 = arith.addf %204, %20 : vector<2x128xf32>
    %206 = vector.extract_strided_slice %205 {offsets = [0, 0], sizes = [2, 32], strides = [1, 1]} : vector<2x128xf32> to vector<2x32xf32>
    %207 = vector.extract_strided_slice %205 {offsets = [0, 32], sizes = [2, 32], strides = [1, 1]} : vector<2x128xf32> to vector<2x32xf32>
    %208 = vector.extract_strided_slice %205 {offsets = [0, 64], sizes = [2, 32], strides = [1, 1]} : vector<2x128xf32> to vector<2x32xf32>
    %209 = vector.extract_strided_slice %205 {offsets = [0, 96], sizes = [2, 32], strides = [1, 1]} : vector<2x128xf32> to vector<2x32xf32>
    %210 = arith.mulf %207, %169 : vector<2x32xf32>
    %211 = arith.mulf %206, %208 : vector<2x32xf32>
    %212 = arith.addf %210, %211 : vector<2x32xf32>
    %213 = math.tanh %212 : vector<2x32xf32>
    %214 = arith.mulf %209, %213 : vector<2x32xf32>
    %215 = arith.addf %195, %214 : vector<2x32xf32>
    %cst_47 = arith.constant dense<0.000000e+00> : vector<2xf32>
    %216 = vector.multi_reduction <add>, %215, %cst_47 [1] : vector<2x32xf32> to vector<2xf32>
    %217 = vector.shape_cast %216 : vector<2xf32> to vector<2x1xf32>
    %cst_48 = arith.constant 3.200000e+01 : f32
    %218 = vector.broadcast %cst_48 : f32 to vector<2x1xf32>
    %219 = arith.divf %217, %218 : vector<2x1xf32>
    %220 = vector.broadcast %219 : vector<2x1xf32> to vector<2x32xf32>
    %221 = arith.subf %215, %220 : vector<2x32xf32>
    %222 = arith.mulf %221, %221 : vector<2x32xf32>
    %cst_49 = arith.constant dense<0.000000e+00> : vector<2xf32>
    %223 = vector.multi_reduction <add>, %222, %cst_49 [1] : vector<2x32xf32> to vector<2xf32>
    %224 = vector.shape_cast %223 : vector<2xf32> to vector<2x1xf32>
    %cst_50 = arith.constant 3.200000e+01 : f32
    %225 = vector.broadcast %cst_50 : f32 to vector<2x1xf32>
    %226 = arith.divf %224, %225 : vector<2x1xf32>
    %227 = vector.broadcast %219 : vector<2x1xf32> to vector<2x32xf32>
    %228 = arith.subf %215, %227 : vector<2x32xf32>
    %cst_51 = arith.constant 9.99999996E-13 : f32
    %229 = vector.broadcast %cst_51 : f32 to vector<2x1xf32>
    %230 = arith.addf %226, %229 : vector<2x1xf32>
    %231 = math.rsqrt %230 : vector<2x1xf32>
    %232 = vector.broadcast %231 : vector<2x1xf32> to vector<2x32xf32>
    %233 = arith.mulf %228, %232 : vector<2x32xf32>
    %234 = vector.broadcast %2 : vector<1x32xf32> to vector<2x32xf32>
    %235 = arith.mulf %233, %234 : vector<2x32xf32>
    %236 = vector.broadcast %3 : vector<1x32xf32> to vector<2x32xf32>
    %237 = arith.addf %235, %236 : vector<2x32xf32>
    %238 = vector.extract_strided_slice %0 {offsets = [10, 0], sizes = [2, 32], strides = [1, 1]} : vector<16x32xf32> to vector<2x32xf32>
    %239 = vector.extract_strided_slice %8 {offsets = [10, 0], sizes = [2, 128], strides = [1, 1]} : vector<16x128xf32> to vector<2x128xf32>
    %cst_52 = arith.constant dense<0.000000e+00> : vector<2x128xf32>
    %240 = tpu.matmul %214, %1, %cst_52 {dimension_numbers = #tpu.dot_dimension_numbers<[1], [0], [0], [1], [0, 0, 1, 1], [], []>} : vector<2x32xf32>, vector<32x128xf32>, vector<2x128xf32> -> vector<2x128xf32>
    %241 = arith.addf %239, %240 : vector<2x128xf32>
    %242 = arith.negf %241 : vector<2x128xf32>
    %243 = math.exp %242 : vector<2x128xf32>
    %cst_53 = arith.constant 1.000000e+00 : f32
    %244 = vector.broadcast %cst_53 : f32 to vector<2x128xf32>
    %245 = arith.addf %244, %243 : vector<2x128xf32>
    %246 = arith.divf %244, %245 : vector<2x128xf32>
    %247 = arith.mulf %246, %17 : vector<2x128xf32>
    %248 = arith.addf %247, %20 : vector<2x128xf32>
    %249 = vector.extract_strided_slice %248 {offsets = [0, 0], sizes = [2, 32], strides = [1, 1]} : vector<2x128xf32> to vector<2x32xf32>
    %250 = vector.extract_strided_slice %248 {offsets = [0, 32], sizes = [2, 32], strides = [1, 1]} : vector<2x128xf32> to vector<2x32xf32>
    %251 = vector.extract_strided_slice %248 {offsets = [0, 64], sizes = [2, 32], strides = [1, 1]} : vector<2x128xf32> to vector<2x32xf32>
    %252 = vector.extract_strided_slice %248 {offsets = [0, 96], sizes = [2, 32], strides = [1, 1]} : vector<2x128xf32> to vector<2x32xf32>
    %253 = arith.mulf %250, %212 : vector<2x32xf32>
    %254 = arith.mulf %249, %251 : vector<2x32xf32>
    %255 = arith.addf %253, %254 : vector<2x32xf32>
    %256 = math.tanh %255 : vector<2x32xf32>
    %257 = arith.mulf %252, %256 : vector<2x32xf32>
    %258 = arith.addf %238, %257 : vector<2x32xf32>
    %cst_54 = arith.constant dense<0.000000e+00> : vector<2xf32>
    %259 = vector.multi_reduction <add>, %258, %cst_54 [1] : vector<2x32xf32> to vector<2xf32>
    %260 = vector.shape_cast %259 : vector<2xf32> to vector<2x1xf32>
    %cst_55 = arith.constant 3.200000e+01 : f32
    %261 = vector.broadcast %cst_55 : f32 to vector<2x1xf32>
    %262 = arith.divf %260, %261 : vector<2x1xf32>
    %263 = vector.broadcast %262 : vector<2x1xf32> to vector<2x32xf32>
    %264 = arith.subf %258, %263 : vector<2x32xf32>
    %265 = arith.mulf %264, %264 : vector<2x32xf32>
    %cst_56 = arith.constant dense<0.000000e+00> : vector<2xf32>
    %266 = vector.multi_reduction <add>, %265, %cst_56 [1] : vector<2x32xf32> to vector<2xf32>
    %267 = vector.shape_cast %266 : vector<2xf32> to vector<2x1xf32>
    %cst_57 = arith.constant 3.200000e+01 : f32
    %268 = vector.broadcast %cst_57 : f32 to vector<2x1xf32>
    %269 = arith.divf %267, %268 : vector<2x1xf32>
    %270 = vector.broadcast %262 : vector<2x1xf32> to vector<2x32xf32>
    %271 = arith.subf %258, %270 : vector<2x32xf32>
    %cst_58 = arith.constant 9.99999996E-13 : f32
    %272 = vector.broadcast %cst_58 : f32 to vector<2x1xf32>
    %273 = arith.addf %269, %272 : vector<2x1xf32>
    %274 = math.rsqrt %273 : vector<2x1xf32>
    %275 = vector.broadcast %274 : vector<2x1xf32> to vector<2x32xf32>
    %276 = arith.mulf %271, %275 : vector<2x32xf32>
    %277 = vector.broadcast %2 : vector<1x32xf32> to vector<2x32xf32>
    %278 = arith.mulf %276, %277 : vector<2x32xf32>
    %279 = vector.broadcast %3 : vector<1x32xf32> to vector<2x32xf32>
    %280 = arith.addf %278, %279 : vector<2x32xf32>
    %281 = vector.extract_strided_slice %0 {offsets = [12, 0], sizes = [2, 32], strides = [1, 1]} : vector<16x32xf32> to vector<2x32xf32>
    %282 = vector.extract_strided_slice %8 {offsets = [12, 0], sizes = [2, 128], strides = [1, 1]} : vector<16x128xf32> to vector<2x128xf32>
    %cst_59 = arith.constant dense<0.000000e+00> : vector<2x128xf32>
    %283 = tpu.matmul %257, %1, %cst_59 {dimension_numbers = #tpu.dot_dimension_numbers<[1], [0], [0], [1], [0, 0, 1, 1], [], []>} : vector<2x32xf32>, vector<32x128xf32>, vector<2x128xf32> -> vector<2x128xf32>
    %284 = arith.addf %282, %283 : vector<2x128xf32>
    %285 = arith.negf %284 : vector<2x128xf32>
    %286 = math.exp %285 : vector<2x128xf32>
    %cst_60 = arith.constant 1.000000e+00 : f32
    %287 = vector.broadcast %cst_60 : f32 to vector<2x128xf32>
    %288 = arith.addf %287, %286 : vector<2x128xf32>
    %289 = arith.divf %287, %288 : vector<2x128xf32>
    %290 = arith.mulf %289, %17 : vector<2x128xf32>
    %291 = arith.addf %290, %20 : vector<2x128xf32>
    %292 = vector.extract_strided_slice %291 {offsets = [0, 0], sizes = [2, 32], strides = [1, 1]} : vector<2x128xf32> to vector<2x32xf32>
    %293 = vector.extract_strided_slice %291 {offsets = [0, 32], sizes = [2, 32], strides = [1, 1]} : vector<2x128xf32> to vector<2x32xf32>
    %294 = vector.extract_strided_slice %291 {offsets = [0, 64], sizes = [2, 32], strides = [1, 1]} : vector<2x128xf32> to vector<2x32xf32>
    %295 = vector.extract_strided_slice %291 {offsets = [0, 96], sizes = [2, 32], strides = [1, 1]} : vector<2x128xf32> to vector<2x32xf32>
    %296 = arith.mulf %293, %255 : vector<2x32xf32>
    %297 = arith.mulf %292, %294 : vector<2x32xf32>
    %298 = arith.addf %296, %297 : vector<2x32xf32>
    %299 = math.tanh %298 : vector<2x32xf32>
    %300 = arith.mulf %295, %299 : vector<2x32xf32>
    %301 = arith.addf %281, %300 : vector<2x32xf32>
    %cst_61 = arith.constant dense<0.000000e+00> : vector<2xf32>
    %302 = vector.multi_reduction <add>, %301, %cst_61 [1] : vector<2x32xf32> to vector<2xf32>
    %303 = vector.shape_cast %302 : vector<2xf32> to vector<2x1xf32>
    %cst_62 = arith.constant 3.200000e+01 : f32
    %304 = vector.broadcast %cst_62 : f32 to vector<2x1xf32>
    %305 = arith.divf %303, %304 : vector<2x1xf32>
    %306 = vector.broadcast %305 : vector<2x1xf32> to vector<2x32xf32>
    %307 = arith.subf %301, %306 : vector<2x32xf32>
    %308 = arith.mulf %307, %307 : vector<2x32xf32>
    %cst_63 = arith.constant dense<0.000000e+00> : vector<2xf32>
    %309 = vector.multi_reduction <add>, %308, %cst_63 [1] : vector<2x32xf32> to vector<2xf32>
    %310 = vector.shape_cast %309 : vector<2xf32> to vector<2x1xf32>
    %cst_64 = arith.constant 3.200000e+01 : f32
    %311 = vector.broadcast %cst_64 : f32 to vector<2x1xf32>
    %312 = arith.divf %310, %311 : vector<2x1xf32>
    %313 = vector.broadcast %305 : vector<2x1xf32> to vector<2x32xf32>
    %314 = arith.subf %301, %313 : vector<2x32xf32>
    %cst_65 = arith.constant 9.99999996E-13 : f32
    %315 = vector.broadcast %cst_65 : f32 to vector<2x1xf32>
    %316 = arith.addf %312, %315 : vector<2x1xf32>
    %317 = math.rsqrt %316 : vector<2x1xf32>
    %318 = vector.broadcast %317 : vector<2x1xf32> to vector<2x32xf32>
    %319 = arith.mulf %314, %318 : vector<2x32xf32>
    %320 = vector.broadcast %2 : vector<1x32xf32> to vector<2x32xf32>
    %321 = arith.mulf %319, %320 : vector<2x32xf32>
    %322 = vector.broadcast %3 : vector<1x32xf32> to vector<2x32xf32>
    %323 = arith.addf %321, %322 : vector<2x32xf32>
    %324 = vector.extract_strided_slice %0 {offsets = [14, 0], sizes = [2, 32], strides = [1, 1]} : vector<16x32xf32> to vector<2x32xf32>
    %325 = vector.extract_strided_slice %8 {offsets = [14, 0], sizes = [2, 128], strides = [1, 1]} : vector<16x128xf32> to vector<2x128xf32>
    %cst_66 = arith.constant dense<0.000000e+00> : vector<2x128xf32>
    %326 = tpu.matmul %300, %1, %cst_66 {dimension_numbers = #tpu.dot_dimension_numbers<[1], [0], [0], [1], [0, 0, 1, 1], [], []>} : vector<2x32xf32>, vector<32x128xf32>, vector<2x128xf32> -> vector<2x128xf32>
    %327 = arith.addf %325, %326 : vector<2x128xf32>
    %328 = arith.negf %327 : vector<2x128xf32>
    %329 = math.exp %328 : vector<2x128xf32>
    %cst_67 = arith.constant 1.000000e+00 : f32
    %330 = vector.broadcast %cst_67 : f32 to vector<2x128xf32>
    %331 = arith.addf %330, %329 : vector<2x128xf32>
    %332 = arith.divf %330, %331 : vector<2x128xf32>
    %333 = arith.mulf %332, %17 : vector<2x128xf32>
    %334 = arith.addf %333, %20 : vector<2x128xf32>
    %335 = vector.extract_strided_slice %334 {offsets = [0, 0], sizes = [2, 32], strides = [1, 1]} : vector<2x128xf32> to vector<2x32xf32>
    %336 = vector.extract_strided_slice %334 {offsets = [0, 32], sizes = [2, 32], strides = [1, 1]} : vector<2x128xf32> to vector<2x32xf32>
    %337 = vector.extract_strided_slice %334 {offsets = [0, 64], sizes = [2, 32], strides = [1, 1]} : vector<2x128xf32> to vector<2x32xf32>
    %338 = vector.extract_strided_slice %334 {offsets = [0, 96], sizes = [2, 32], strides = [1, 1]} : vector<2x128xf32> to vector<2x32xf32>
    %339 = arith.mulf %336, %298 : vector<2x32xf32>
    %340 = arith.mulf %335, %337 : vector<2x32xf32>
    %341 = arith.addf %339, %340 : vector<2x32xf32>
    %342 = math.tanh %341 : vector<2x32xf32>
    %343 = arith.mulf %338, %342 : vector<2x32xf32>
    %344 = arith.addf %324, %343 : vector<2x32xf32>
    %cst_68 = arith.constant dense<0.000000e+00> : vector<2xf32>
    %345 = vector.multi_reduction <add>, %344, %cst_68 [1] : vector<2x32xf32> to vector<2xf32>
    %346 = vector.shape_cast %345 : vector<2xf32> to vector<2x1xf32>
    %cst_69 = arith.constant 3.200000e+01 : f32
    %347 = vector.broadcast %cst_69 : f32 to vector<2x1xf32>
    %348 = arith.divf %346, %347 : vector<2x1xf32>
    %349 = vector.broadcast %348 : vector<2x1xf32> to vector<2x32xf32>
    %350 = arith.subf %344, %349 : vector<2x32xf32>
    %351 = arith.mulf %350, %350 : vector<2x32xf32>
    %cst_70 = arith.constant dense<0.000000e+00> : vector<2xf32>
    %352 = vector.multi_reduction <add>, %351, %cst_70 [1] : vector<2x32xf32> to vector<2xf32>
    %353 = vector.shape_cast %352 : vector<2xf32> to vector<2x1xf32>
    %cst_71 = arith.constant 3.200000e+01 : f32
    %354 = vector.broadcast %cst_71 : f32 to vector<2x1xf32>
    %355 = arith.divf %353, %354 : vector<2x1xf32>
    %356 = vector.broadcast %348 : vector<2x1xf32> to vector<2x32xf32>
    %357 = arith.subf %344, %356 : vector<2x32xf32>
    %cst_72 = arith.constant 9.99999996E-13 : f32
    %358 = vector.broadcast %cst_72 : f32 to vector<2x1xf32>
    %359 = arith.addf %355, %358 : vector<2x1xf32>
    %360 = math.rsqrt %359 : vector<2x1xf32>
    %361 = vector.broadcast %360 : vector<2x1xf32> to vector<2x32xf32>
    %362 = arith.mulf %357, %361 : vector<2x32xf32>
    %363 = vector.broadcast %2 : vector<1x32xf32> to vector<2x32xf32>
    %364 = arith.mulf %362, %363 : vector<2x32xf32>
    %365 = vector.broadcast %3 : vector<1x32xf32> to vector<2x32xf32>
    %366 = arith.addf %364, %365 : vector<2x32xf32>
    %367 = tpu.concatenate %65, %108, %151, %194, %237, %280, %323, %366 in 1 : vector<2x32xf32>, vector<2x32xf32>, vector<2x32xf32>, vector<2x32xf32>, vector<2x32xf32>, vector<2x32xf32>, vector<2x32xf32>, vector<2x32xf32> -> vector<2x256xf32>
    %c0_73 = arith.constant 0 : index
    %c0_74 = arith.constant 0 : index
    %368 = vector.load %arg6[%c0_73, %c0_74] : memref<2x256xf32, #tpu.memory_space<vmem>>, vector<2x256xf32>
    tpu.vector_store %arg6[%c0_73, %c0_74], %367 {strides = array<i32>} : memref<2x256xf32, #tpu.memory_space<vmem>>, vector<2x256xf32>,
    return
  }
}

</mosaic_0001>

<bundles_post_ra>
// kernel: san_layer_forward.1
= control target key start
LH: loop header
LB: loop body
LE: loop exit
PB: predicated region body
PF: predicated region fallthrough
CT: control target
= control target key end

     0   :  { %v1437_v2 = vmov 0.0   ;;  %vm1438_vm0 = vmmov 0   ;;  %vm42_vm1 = vcmask 261120   ;;  %v124_v21 = vlaneseq  ;;  %s1442_s21 = smov 96   ;;  %s1775_s1 = inlined_call_operand.vmem [shape: f32[32,128], index: 1, kind: input, shape index: {}]   ;;  %s1776_s2 = inlined_call_operand.vmem [shape: f32[32,128], index: 2, kind: input, shape index: {}]   ;;  %s1777_s0 = inlined_call_operand.vmem [shape: f32[16,32], index: 0, kind: input, shape index: {}]   ;;  %s1778_s3 = inlined_call_operand.vmem [shape: f32[1,128], index: 3, kind: input, shape index: {}]   ;;  %s1779_s4 = inlined_call_operand.vmem [shape: f32[1,32], index: 4, kind: input, shape index: {}]   ;;  %s1780_s5 = inlined_call_operand.vmem [shape: f32[1,32], index: 5, kind: input, shape index: {}]   ;;  %s1781_s6 = inlined_call_operand.vmem [shape: f32[2,256], index: 6, kind: output, shape index: {}]  }
   0x1   :  { %v34_v0 = vld [vmem:[%s1775_s1 + $0x18] sm:$0xff]  ;;  %v33_v1 = vld [vmem:[%s1775_s1 + $0x10] sm:$0xff]  ;;  %1279 = vmatprep.subr.mxu1 %v1437_v2  ;;  %1287 = vmatprep.mubr.msk.f32.mxu1 %vm1438_vm0, %v1437_v2  ;;  %v32_v5 = vld [vmem:[%s1775_s1 + $0x8] sm:$0xff]  ;;  %v1439_v24 = vmov 1.0   ;;  %vm373_vm5 = vcmask 257026   ;;  %vm501_vm6 = vcmask 259076  }
   0x2   :  { %v1488_v3 = vld [vmem:[%s1776_s2 + $0x18] sm:$0xff]  ;;  %1268 = vmatprep.subr.mxu0 %v34_v0  ;;  %v1496_v4 = vld [vmem:[%s1776_s2 + $0x10] sm:$0xff]  ;;  %v1505_v6 = vld [vmem:[%s1777_s0] sm:$0xff]  ;;  %v125_v23 = vand.u32 127, %v124_v21  ;;  %vm629_vm7 = vcmask 261126   ;;  %vm235_vm8 = vcmask 254976  }
   0x3   :  { %1280 = vmatpush3.msra.mxu1 %v1488_v3  ;;  %1269 = vmatpush3.msra.mxu0 %v34_v0  ;;  %v1511_v7 = vld [vmem:[%s1776_s2 + $0x8] sm:$0xff]  ;;  %v31_v8 = vld [vmem:[%s1775_s1] sm:$0xff]  ;;  %vm1178_vm9 = vcmask 523264   ;;  %vm1180_vm10 = vcmask 785408  }
   0x4   :  { %1281 = vmatprep.subr.mxu1 %v1437_v2  ;;  %1270 = vmatprep.subr.mxu0 %v33_v1  ;;  %v1522_v9 = vld [vmem:[%s1776_s2] sm:$0xff]  ;;  %v1528_v10 = vld [vmem:[%s1777_s0 + $0x8] sm:$0xff]  ;;  %vm126_vm2 = vcmp.ge.s32.totalorder %v125_v23, 64  ;;  %vm127_vm3 = vcmp.lt.s32.totalorder %v125_v23, 96  ;;  %s1440_s2 = smov 64  }
   0x5   :  { %1282 = vmatpush3.msra.mxu1 %v1496_v4  ;;  %1271 = vmatpush3.msra.mxu0 %v33_v1  ;;  %v1201_v11 = vld [vmem:[%s1778_s3] ss:$0 sm:$0xff]  ;;  %vm128_vm4 = vmand %vm126_vm2, %vm127_vm3  ;;  %s1441_s3 = smov 32  }
   0x6   :  { %1283 = vmatprep.subr.mxu1 %v1437_v2  ;;  %1272 = vmatprep.subr.mxu0 %v32_v5  ;;  %v1565_v25 = vsel %vm128_vm4, 2.0, %v1439_v24  ;;  %v1568_v27 = vsel %vm128_vm4, -1.0, %v1437_v2 }
   0x7   :  { %1276 = vmatprep.mubr.msk.f32.mxu0 %vm42_vm1, %v1505_v6  ;;  %1273 = vmatpush3.msra.mxu0 %v32_v5 }
   0x8   :  { %1284 = vmatpush3.msra.mxu1 %v1511_v7  ;;  %1274 = vmatprep.subr.mxu0 %v31_v8 }
   0x9   :  { %1285 = vmatprep.subr.mxu1 %v1437_v2  ;;  %1275 = vmatpush3.msra.mxu0 %v31_v8 }
   0xa   :  { %1286 = vmatpush3.msra.mxu1 %v1522_v9  ;;  %1277 = vmatmul.mubr.msk.f32.vlgmr.msra.gmra.mxu0 %vm42_vm1, %v1528_v10 }
   0xb   :  { %1288 = vmatmul.mubr.f32.vlgmr.msra.gmra.mxu1 %v1437_v2  ;;  %1290 = vmatprep.subr.mxu0 %v1437_v2 }
   0xc   :  { %1298 = vmatprep.mubr.msk.f32.mxu0 %vm1438_vm0, %v1437_v2  ;;  %1291 = vmatpush3.msra.mxu0 %v1488_v3 }
   0xd   :  { %1301 = vmatprep.subr.mxu1 %v1437_v2  ;;  %1292 = vmatprep.subr.mxu0 %v1437_v2 }
   0xe   :  { %1302 = vmatpush3.msra.mxu1 %v1488_v3  ;;  %1293 = vmatpush3.msra.mxu0 %v1496_v4 }
   0xf   :  { %1303 = vmatprep.subr.mxu1 %v1437_v2  ;;  %1294 = vmatprep.subr.mxu0 %v1437_v2 }
  0x10   :  { %1304 = vmatpush3.msra.mxu1 %v1496_v4  ;;  %1295 = vmatpush3.msra.mxu0 %v1511_v7 }
  0x11   :  { %1305 = vmatprep.subr.mxu1 %v1437_v2  ;;  %1296 = vmatprep.subr.mxu0 %v1437_v2 }
  0x12   :  { %1306 = vmatpush3.msra.mxu1 %v1511_v7  ;;  %1297 = vmatpush3.msra.mxu0 %v1522_v9 }
  0x13   :  { %1307 = vmatprep.subr.mxu1 %v1437_v2  ;;  %1309 = vmatprep.mubr.msk.f32.mxu1 %vm1438_vm0, %v1437_v2 }
  0x14   :  { %1308 = vmatpush3.msra.mxu1 %v1522_v9  ;;  %1312 = vmatprep.subr.mxu0 %v1437_v2 }
  0x15   :  { %1323 = vmatprep.subr.mxu1 %v1437_v2 }
  0xca   :  { %v1278_v12 = vpop.f32.mrf.mxu0 }
  0xcb   :  { %v200_v13 = vpop.f32.mrf.mxu1  ;;  %v1560_v14 = vadd.f32 %v1278_v12, %v1201_v11 }
  0xcc   :  { %v115_v15 = vpop.f32.mrf.mxu0 }
  0xcd   :  { %v1289_v16 = vpop.f32.mrf.mxu1  ;;  %v1562_v17 = vadd.f32 %v1201_v11, %v115_v15 }
  0xcf   :  { %v204_v18 = vadd.f32 %v200_v13, %v1562_v17 }
  0xd1   :  { %v1204_v19 = vmul.f32 -1.442695, %v204_v18 }
  0xd3   :  { %1373 = vpow2.f32 %v1204_v19 }
  0xe0   :  { %v1374_v20 = vpop.eup %1373 }
  0xe1   :  { %v208_v22 = vadd.f32 1.0, %v1374_v20 }
  0xe3   :  { %1375 = vrcp.f32 %v208_v22 }
  0xf0   :  { %v1376_v26 = vpop.eup %1375 }
  0xf1   :  { %v211_v28 = vmul.f32 %v1376_v26, %v1565_v25 }
  0xf3   :  { %v212_v29 = vadd.f32 %v211_v28, %v1568_v27 }
  0xf5   :  { %215 = vrot.lane.b32.xlu0 %v212_v29, %s1440_s2  ;;  %v213_v32 = vmul.f32 0.0, %v212_v29 }
 0x167   :  { %v216_v30 = vpop.permute.xlu0 %215 }
 0x168   :  { %v218_v31 = vmul.f32 %v216_v30, %v212_v29 }
 0x16a   :  { %220 = vrot.lane.b32.xlu0 %v218_v31, %s1441_s3 }
 0x1dc   :  { %v221_v33 = vpop.permute.xlu0 %220 }
 0x1dd   :  { %v223_v34 = vadd.f32 %v221_v33, %v213_v32 }
 0x1df   :  { %1377 = vtanh.f32 %v223_v34  ;;  %v349_v51 = vrot.slane %v223_v34, 6 }
 0x1ec   :  { %v1378_v35 = vpop.eup %1377 }
 0x1ed   :  { %226 = vrot.lane.b32.xlu1 %v1378_v35, %s1440_s2 }
 0x25f   :  { %v227_v36 = vpop.permute.xlu1 %226 }
 0x260   :  { %v229_v37 = vmul.f32 %v227_v36, %v212_v29 }
 0x262   :  { %231 = vrot.lane.b32.xlu1 %v229_v37, %s1441_s3 }
 0x2d4   :  { %v1576_v38 = vpop.permute.xlu1 %231 }
 0x2d5   :  { %1299 = vmatmul.mubr.msk.f32.vlgmr.msra.gmra.mxu0 %vm42_vm1, %v1576_v38 }
 0x2d6   :  { %1313 = vmatpush3.msra.mxu0 %v1488_v3  ;;  %1320 = vmatprep.mubr.msk.f32.mxu0 %vm1438_vm0, %v1437_v2 }
 0x2d7   :  { %1314 = vmatprep.subr.mxu0 %v1437_v2 }
 0x2d8   :  { %1315 = vmatpush3.msra.mxu0 %v1496_v4 }
 0x2d9   :  { %1316 = vmatprep.subr.mxu0 %v1437_v2 }
 0x2da   :  { %1317 = vmatpush3.msra.mxu0 %v1511_v7 }
 0x2db   :  { %1318 = vmatprep.subr.mxu0 %v1437_v2 }
 0x2dc   :  { %1319 = vmatpush3.msra.mxu0 %v1522_v9 }
 0x2dd   :  { %1334 = vmatprep.subr.mxu0 %v1437_v2 }
 0x395   :  { %v332_v39 = vpop.f32.mrf.mxu0 }
 0x396   :  { %v337_v40 = vrot.slane %v332_v39, 6 }
 0x397   :  { %v1300_v41 = vpop.f32.mrf.mxu0 }
 0x398   :  { %v339_v42 = vadd.f32 %v337_v40, %v1562_v17 }
 0x39a   :  { %v1208_v43 = vmul.f32 -1.442695, %v339_v42 }
 0x39c   :  { %1379 = vpow2.f32 %v1208_v43 }
 0x3a9   :  { %v1380_v44 = vpop.eup %1379 }
 0x3aa   :  { %v343_v45 = vadd.f32 1.0, %v1380_v44 }
 0x3ac   :  { %1381 = vrcp.f32 %v343_v45 }
 0x3b9   :  { %v1382_v46 = vpop.eup %1381 }
 0x3ba   :  { %v346_v47 = vmul.f32 %v1382_v46, %v1565_v25 }
 0x3bc   :  { %v347_v48 = vadd.f32 %v346_v47, %v1568_v27 }
 0x3be   :  { %353 = vrot.lane.b32.xlu0 %v347_v48, %s1440_s2  ;;  %v351_v52 = vmul.f32 %v349_v51, %v347_v48 }
 0x430   :  { %v354_v49 = vpop.permute.xlu0 %353 }
 0x431   :  { %v356_v50 = vmul.f32 %v354_v49, %v347_v48 }
 0x433   :  { %358 = vrot.lane.b32.xlu1 %v356_v50, %s1441_s3 }
 0x4a5   :  { %v359_v53 = vpop.permute.xlu1 %358 }
 0x4a6   :  { %v361_v54 = vadd.f32 %v359_v53, %v351_v52 }
 0x4a8   :  { %1383 = vtanh.f32 %v361_v54  ;;  %v477_v16 = vrot.slane %v361_v54, 6 }
 0x4b5   :  { %v1384_v55 = vpop.eup %1383 }
 0x4b6   :  { %364 = vrot.lane.b32.xlu0 %v1384_v55, %s1440_s2 }
 0x528   :  { %v365_v56 = vpop.permute.xlu0 %364 }
 0x529   :  { %v1596_v57 = vmul.f32 %v365_v56, %v347_v48 }
 0x52b   :  { %v389_v58 = vrot.slane %v1596_v57, 2 }
 0x52d   :  { %390 = vrot.lane.b32.xlu1 %v389_v58, %s1441_s3 }
 0x59f   :  { %v391_v59 = vpop.permute.xlu1 %390 }
 0x5a0   :  { %1310 = vmatmul.mubr.msk.f32.vlgmr.msra.gmra.mxu1 %vm42_vm1, %v391_v59 }
 0x5a1   :  { %1324 = vmatpush3.msra.mxu1 %v1488_v3  ;;  %1331 = vmatprep.mubr.msk.f32.mxu1 %vm1438_vm0, %v1437_v2 }
 0x5a2   :  { %1325 = vmatprep.subr.mxu1 %v1437_v2 }
 0x5a3   :  { %1326 = vmatpush3.msra.mxu1 %v1496_v4 }
 0x5a4   :  { %1327 = vmatprep.subr.mxu1 %v1437_v2 }
 0x5a5   :  { %1328 = vmatpush3.msra.mxu1 %v1511_v7 }
 0x5a6   :  { %1329 = vmatprep.subr.mxu1 %v1437_v2 }
 0x5a7   :  { %1330 = vmatpush3.msra.mxu1 %v1522_v9 }
 0x5a8   :  { %1345 = vmatprep.subr.mxu1 %v1437_v2 }
 0x660   :  { %v460_v60 = vpop.f32.mrf.mxu1 }
 0x661   :  { %v465_v61 = vrot.slane %v460_v60, 4 }
 0x662   :  { %v1311_v62 = vpop.f32.mrf.mxu1 }
 0x663   :  { %v467_v63 = vadd.f32 %v465_v61, %v1562_v17 }
 0x665   :  { %v1210_v0 = vmul.f32 -1.442695, %v467_v63 }
 0x667   :  { %1385 = vpow2.f32 %v1210_v0 }
 0x674   :  { %v1386_v1 = vpop.eup %1385 }
 0x675   :  { %v471_v5 = vadd.f32 1.0, %v1386_v1 }
 0x677   :  { %1387 = vrcp.f32 %v471_v5 }
 0x684   :  { %v1388_v8 = vpop.eup %1387 }
 0x685   :  { %v474_v11 = vmul.f32 %v1388_v8, %v1565_v25 }
 0x687   :  { %v475_v12 = vadd.f32 %v474_v11, %v1568_v27 }
 0x689   :  { %481 = vrot.lane.b32.xlu0 %v475_v12, %s1440_s2  ;;  %v479_v18 = vmul.f32 %v477_v16, %v475_v12 }
 0x6fb   :  { %v482_v13 = vpop.permute.xlu0 %481 }
 0x6fc   :  { %v484_v15 = vmul.f32 %v482_v13, %v475_v12 }
 0x6fe   :  { %486 = vrot.lane.b32.xlu1 %v484_v15, %s1441_s3 }
 0x770   :  { %v487_v19 = vpop.permute.xlu1 %486 }
 0x771   :  { %v489_v20 = vadd.f32 %v487_v19, %v479_v18 }
 0x773   :  { %1389 = vtanh.f32 %v489_v20  ;;  %v605_v41 = vrot.slane %v489_v20, 6 }
 0x780   :  { %v1390_v21 = vpop.eup %1389 }
 0x781   :  { %492 = vrot.lane.b32.xlu0 %v1390_v21, %s1440_s2 }
 0x7f3   :  { %v493_v22 = vpop.permute.xlu0 %492 }
 0x7f4   :  { %v1617_v23 = vmul.f32 %v493_v22, %v475_v12 }
 0x7f6   :  { %v517_v24 = vrot.slane %v1617_v23, 4 }
 0x7f8   :  { %518 = vrot.lane.b32.xlu1 %v517_v24, %s1441_s3 }
 0x86a   :  { %v519_v26 = vpop.permute.xlu1 %518 }
 0x86b   :  { %1321 = vmatmul.mubr.msk.f32.vlgmr.msra.gmra.mxu0 %vm42_vm1, %v519_v26 }
 0x86c   :  { %1335 = vmatpush3.msra.mxu0 %v1488_v3  ;;  %1342 = vmatprep.mubr.msk.f32.mxu0 %vm1438_vm0, %v1437_v2 }
 0x86d   :  { %1336 = vmatprep.subr.mxu0 %v1437_v2 }
 0x86e   :  { %1337 = vmatpush3.msra.mxu0 %v1496_v4 }
 0x86f   :  { %1338 = vmatprep.subr.mxu0 %v1437_v2 }
 0x870   :  { %1339 = vmatpush3.msra.mxu0 %v1511_v7 }
 0x871   :  { %1340 = vmatprep.subr.mxu0 %v1437_v2 }
 0x872   :  { %1341 = vmatpush3.msra.mxu0 %v1522_v9 }
 0x873   :  { %1356 = vmatprep.subr.mxu0 %v1437_v2 }
 0x92b   :  { %v588_v28 = vpop.f32.mrf.mxu0 }
 0x92c   :  { %v593_v29 = vrot.slane %v588_v28, 2 }
 0x92d   :  { %v1322_v30 = vpop.f32.mrf.mxu0 }
 0x92e   :  { %v595_v31 = vadd.f32 %v593_v29, %v1562_v17 }
 0x930   :  { %v1212_v32 = vmul.f32 -1.442695, %v595_v31 }
 0x932   :  { %1391 = vpow2.f32 %v1212_v32 }
 0x93f   :  { %v1392_v33 = vpop.eup %1391 }
 0x940   :  { %v599_v34 = vadd.f32 1.0, %v1392_v33 }
 0x942   :  { %1393 = vrcp.f32 %v599_v34 }
 0x94f   :  { %v1394_v35 = vpop.eup %1393 }
 0x950   :  { %v602_v36 = vmul.f32 %v1394_v35, %v1565_v25 }
 0x952   :  { %v603_v37 = vadd.f32 %v602_v36, %v1568_v27 }
 0x954   :  { %609 = vrot.lane.b32.xlu0 %v603_v37, %s1440_s2  ;;  %v607_v42 = vmul.f32 %v605_v41, %v603_v37 }
 0x9c6   :  { %v610_v39 = vpop.permute.xlu0 %609 }
 0x9c7   :  { %v612_v40 = vmul.f32 %v610_v39, %v603_v37 }
 0x9c9   :  { %614 = vrot.lane.b32.xlu1 %v612_v40, %s1441_s3 }
 0xa3b   :  { %v615_v43 = vpop.permute.xlu1 %614 }
 0xa3c   :  { %v617_v17 = vadd.f32 %v615_v43, %v607_v42 }
 0xa3e   :  { %1395 = vtanh.f32 %v617_v17  ;;  %v730_v61 = vrot.slane %v617_v17, 6 }
 0xa4b   :  { %v1396_v44 = vpop.eup %1395 }
 0xa4c   :  { %620 = vrot.lane.b32.xlu0 %v1396_v44, %s1440_s2 }
 0xabe   :  { %v621_v45 = vpop.permute.xlu0 %620 }
 0xabf   :  { %v1638_v46 = vmul.f32 %v621_v45, %v603_v37 }
 0xac1   :  { %v645_v47 = vrot.slane %v1638_v46, 6 }
 0xac3   :  { %646 = vrot.lane.b32.xlu1 %v645_v47, %s1441_s3 }
 0xb35   :  { %v647_v48 = vpop.permute.xlu1 %646 }
 0xb36   :  { %1332 = vmatmul.mubr.msk.f32.vlgmr.msra.gmra.mxu1 %vm42_vm1, %v647_v48 }
 0xb37   :  { %1346 = vmatpush3.msra.mxu1 %v1488_v3  ;;  %1353 = vmatprep.mubr.msk.f32.mxu1 %vm1438_vm0, %v1437_v2 }
 0xb38   :  { %1347 = vmatprep.subr.mxu1 %v1437_v2 }
 0xb39   :  { %1348 = vmatpush3.msra.mxu1 %v1496_v4 }
 0xb3a   :  { %1349 = vmatprep.subr.mxu1 %v1437_v2 }
 0xb3b   :  { %1350 = vmatpush3.msra.mxu1 %v1511_v7 }
 0xb3c   :  { %1351 = vmatprep.subr.mxu1 %v1437_v2 }
 0xb3d   :  { %1352 = vmatpush3.msra.mxu1 %v1522_v9 }
 0xbf6   :  { %v716_v49 = vpop.f32.mrf.mxu1 }
 0xbf7   :  { %v720_v50 = vadd.f32 %v716_v49, %v1560_v14 }
 0xbf8   :  { %v1333_v51 = vpop.f32.mrf.mxu1 }
 0xbf9   :  { %v1214_v52 = vmul.f32 -1.442695, %v720_v50 }
 0xbfb   :  { %1397 = vpow2.f32 %v1214_v52 }
 0xc08   :  { %v1398_v53 = vpop.eup %1397 }
 0xc09   :  { %v724_v54 = vadd.f32 1.0, %v1398_v53 }
 0xc0b   :  { %1399 = vrcp.f32 %v724_v54 }
 0xc18   :  { %v1400_v55 = vpop.eup %1399 }
 0xc19   :  { %v727_v56 = vmul.f32 %v1400_v55, %v1565_v25 }
 0xc1b   :  { %v728_v58 = vadd.f32 %v727_v56, %v1568_v27 }
 0xc1d   :  { %734 = vrot.lane.b32.xlu0 %v728_v58, %s1440_s2  ;;  %v732_v62 = vmul.f32 %v730_v61, %v728_v58 }
 0xc8f   :  { %v735_v59 = vpop.permute.xlu0 %734 }
 0xc90   :  { %v737_v60 = vmul.f32 %v735_v59, %v728_v58 }
 0xc92   :  { %739 = vrot.lane.b32.xlu1 %v737_v60, %s1441_s3 }
 0xd04   :  { %v740_v63 = vpop.permute.xlu1 %739 }
 0xd05   :  { %v742_v0 = vadd.f32 %v740_v63, %v732_v62 }
 0xd07   :  { %1401 = vtanh.f32 %v742_v0 }
 0xd14   :  { %v1402_v1 = vpop.eup %1401 }
 0xd15   :  { %745 = vrot.lane.b32.xlu0 %v1402_v1, %s1440_s2 }
 0xd87   :  { %v746_v5 = vpop.permute.xlu0 %745 }
 0xd88   :  { %v748_v8 = vmul.f32 %v746_v5, %v728_v58 }
 0xd8a   :  { %750 = vrot.lane.b32.xlu1 %v748_v8, %s1441_s3 }
 0xdfc   :  { %v1659_v11 = vpop.permute.xlu1 %750 }
 0xdfd   :  { %1343 = vmatmul.mubr.msk.f32.vlgmr.msra.gmra.mxu0 %vm42_vm1, %v1659_v11 }
 0xdfe   :  { %1357 = vmatpush3.msra.mxu0 %v1488_v3  ;;  %1364 = vmatprep.mubr.msk.f32.mxu0 %vm1438_vm0, %v1437_v2 }
 0xdff   :  { %1358 = vmatprep.subr.mxu0 %v1437_v2 }
 0xe00   :  { %1359 = vmatpush3.msra.mxu0 %v1496_v4 }
 0xe01   :  { %1360 = vmatprep.subr.mxu0 %v1437_v2 }
 0xe02   :  { %1361 = vmatpush3.msra.mxu0 %v1511_v7 }
 0xe03   :  { %1362 = vmatprep.subr.mxu0 %v1437_v2 }
 0xe04   :  { %1363 = vmatpush3.msra.mxu0 %v1522_v9  ;;  %v854_v9 = vrot.slane %v742_v0, 6 }
 0xebd   :  { %v837_v12 = vpop.f32.mrf.mxu0 }
 0xebe   :  { %v842_v13 = vrot.slane %v837_v12, 6 }
 0xebf   :  { %v1344_v15 = vpop.f32.mrf.mxu0 }
 0xec0   :  { %v844_v3 = vadd.f32 %v842_v13, %v1560_v14 }
 0xec2   :  { %v1216_v16 = vmul.f32 -1.442695, %v844_v3 }
 0xec4   :  { %1403 = vpow2.f32 %v1216_v16 }
 0xed1   :  { %v1404_v18 = vpop.eup %1403 }
 0xed2   :  { %v848_v19 = vadd.f32 1.0, %v1404_v18 }
 0xed4   :  { %1405 = vrcp.f32 %v848_v19 }
 0xee1   :  { %v1406_v20 = vpop.eup %1405 }
 0xee2   :  { %v851_v4 = vmul.f32 %v1406_v20, %v1565_v25 }
 0xee4   :  { %v852_v21 = vadd.f32 %v851_v4, %v1568_v27 }
 0xee6   :  { %858 = vrot.lane.b32.xlu0 %v852_v21, %s1440_s2  ;;  %v856_v22 = vmul.f32 %v854_v9, %v852_v21 }
 0xf58   :  { %v859_v2 = vpop.permute.xlu0 %858 }
 0xf59   :  { %v861_v7 = vmul.f32 %v859_v2, %v852_v21 }
 0xf5b   :  { %863 = vrot.lane.b32.xlu1 %v861_v7, %s1441_s3 }
 0xfcd   :  { %v864_v24 = vpop.permute.xlu1 %863 }
 0xfce   :  { %v866_v26 = vadd.f32 %v864_v24, %v856_v22 }
 0xfd0   :  { %1407 = vtanh.f32 %v866_v26  ;;  %v981_v45 = vrot.slane %v866_v26, 6 }
 0xfdd   :  { %v1408_v28 = vpop.eup %1407 }
 0xfde   :  { %869 = vrot.lane.b32.xlu0 %v1408_v28, %s1440_s2 }
0x1050   :  { %v870_v29 = vpop.permute.xlu0 %869 }
0x1051   :  { %v1678_v30 = vmul.f32 %v870_v29, %v852_v21  ;;  %v234_v29 = vadd.f32 %v1576_v38, %v1505_v6 }
0x1053   :  { %v893_v31 = vrot.slane %v1678_v30, 2 }
0x1055   :  { %894 = vrot.lane.b32.xlu1 %v893_v31, %s1441_s3 }
0x10c7   :  { %v895_v32 = vpop.permute.xlu1 %894 }
0x10c8   :  { %1354 = vmatmul.mubr.msk.f32.vlgmr.msra.gmra.mxu1 %vm42_vm1, %v895_v32  ;;  %v236_v32 = vsel %vm235_vm8, %v234_v29, 0.0 }
0x1188   :  { %v964_v33 = vpop.f32.mrf.mxu1 }
0x1189   :  { %v969_v34 = vrot.slane %v964_v33, 4 }
0x118a   :  { %v1355_v35 = vpop.f32.mrf.mxu1 }
0x118b   :  { %v971_v36 = vadd.f32 %v969_v34, %v1560_v14 }
0x118d   :  { %v1218_v37 = vmul.f32 -1.442695, %v971_v36 }
0x118f   :  { %1409 = vpow2.f32 %v1218_v37 }
0x119c   :  { %v1410_v39 = vpop.eup %1409 }
0x119d   :  { %v975_v40 = vadd.f32 1.0, %v1410_v39 }
0x119f   :  { %1411 = vrcp.f32 %v975_v40 }
0x11ac   :  { %v1412_v41 = vpop.eup %1411 }
0x11ad   :  { %v978_v42 = vmul.f32 %v1412_v41, %v1565_v25 }
0x11af   :  { %v979_v43 = vadd.f32 %v978_v42, %v1568_v27 }
0x11b1   :  { %985 = vrot.lane.b32.xlu0 %v979_v43, %s1440_s2  ;;  %v983_v47 = vmul.f32 %v981_v45, %v979_v43 }
0x1223   :  { %v986_v17 = vpop.permute.xlu0 %985 }
0x1224   :  { %v988_v44 = vmul.f32 %v986_v17, %v979_v43 }
0x1226   :  { %990 = vrot.lane.b32.xlu1 %v988_v44, %s1441_s3 }
0x1298   :  { %v991_v48 = vpop.permute.xlu1 %990 }
0x1299   :  { %v993_v49 = vadd.f32 %v991_v48, %v983_v47 }
0x129b   :  { %1413 = vtanh.f32 %v993_v49 }
0x12a8   :  { %v1414_v50 = vpop.eup %1413 }
0x12a9   :  { %996 = vrot.lane.b32.xlu0 %v1414_v50, %s1440_s2 }
0x131b   :  { %v997_v51 = vpop.permute.xlu0 %996 }
0x131c   :  { %v999_v52 = vmul.f32 %v997_v51, %v979_v43 }
0x131e   :  { %v1020_v53 = vrot.slane %v999_v52, 4 }
0x1320   :  { %1021 = vrot.lane.b32.xlu1 %v1020_v53, %s1441_s3  ;;  %v753_v53 = vadd.f32 %v1659_v11, %v1528_v10 }
0x1392   :  { %v1022_v54 = vpop.permute.xlu1 %1021 }
0x1393   :  { %1365 = vmatmul.mubr.msk.f32.vlgmr.msra.gmra.mxu0 %vm42_vm1, %v1022_v54 }
0x1453   :  { %v1091_v55 = vpop.f32.mrf.mxu0 }
0x1454   :  { %v1096_v56 = vrot.slane %v1091_v55, 2 }
0x1455   :  { %v1366_v58 = vpop.f32.mrf.mxu0 }
0x1456   :  { %v1098_v59 = vadd.f32 %v1096_v56, %v1560_v14  ;;  %v1108_v14 = vrot.slane %v993_v49, 6  ;;  %v754_v56 = vsel %vm235_vm8, %v753_v53, 0.0 }
0x1458   :  { %v1220_v60 = vmul.f32 -1.442695, %v1098_v59 }
0x145a   :  { %1415 = vpow2.f32 %v1220_v60 }
0x1467   :  { %v1416_v61 = vpop.eup %1415 }
0x1468   :  { %v1102_v62 = vadd.f32 1.0, %v1416_v61 }
0x146a   :  { %1417 = vrcp.f32 %v1102_v62 }
0x1477   :  { %v1418_v63 = vpop.eup %1417 }
0x1478   :  { %v1105_v0 = vmul.f32 %v1418_v63, %v1565_v25 }
0x147a   :  { %v1106_v1 = vadd.f32 %v1105_v0, %v1568_v27 }
0x147c   :  { %1112 = vrot.lane.b32.xlu0 %v1106_v1, %s1440_s2  ;;  %v1110_v12 = vmul.f32 %v1108_v14, %v1106_v1 }
0x14ee   :  { %v1113_v5 = vpop.permute.xlu0 %1112 }
0x14ef   :  { %v1115_v8 = vmul.f32 %v1113_v5, %v1106_v1 }
0x14f1   :  { %1117 = vrot.lane.b32.xlu1 %v1115_v8, %s1441_s3 }
0x14f5   :  { %369 = vrot.lane.b32.xlu1 %v1596_v57, %s1441_s3 }
0x14f9   :  { %497 = vrot.lane.b32.xlu1 %v1617_v23, %s1441_s3 }
0x14fd   :  { %625 = vrot.lane.b32.xlu1 %v1638_v46, %s1441_s3 }
0x1563   :  { %v1118_v25 = vpop.permute.xlu1 %1117 }
0x1564   :  { %v1120_v13 = vadd.f32 %v1118_v25, %v1110_v12 }
0x1566   :  { %1419 = vtanh.f32 %v1120_v13 }
0x1567   :  { %v370_v27 = vpop.permute.xlu1 %369 }
0x1568   :  { %v372_v15 = vadd.f32 %v370_v27, %v1505_v6 }
0x156a   :  { %v374_v3 = vsel %vm373_vm5, %v372_v15, 0.0 }
0x156b   :  { %375 = vadd.xlane.f32.xlu1 %v374_v3  ;;  %v498_v4 = vpop.permute.xlu1 %497 }
0x156c   :  { %v500_v7 = vadd.f32 %v498_v4, %v1505_v6 }
0x156e   :  { %v502_v28 = vsel %vm501_vm6, %v500_v7, 0.0 }
0x156f   :  { %v626_v2 = vpop.permute.xlu1 %625 }
0x1570   :  { %v628_v24 = vadd.f32 %v626_v2, %v1505_v6 }
0x1572   :  { %v630_v31 = vsel %vm629_vm7, %v628_v24, 0.0 }
0x1573   :  { %v1420_v16 = vpop.eup %1419 }
0x1574   :  { %1123 = vrot.lane.b32.xlu0 %v1420_v16, %s1440_s2 }
0x1578   :  { %874 = vrot.lane.b32.xlu0 %v1678_v30, %s1441_s3 }
0x157c   :  { %1001 = vrot.lane.b32.xlu0 %v999_v52, %s1441_s3 }
0x15e6   :  { %v1124_v57 = vpop.permute.xlu0 %1123 }
0x15e7   :  { %v1126_v23 = vmul.f32 %v1124_v57, %v1106_v1 }
0x15e9   :  { %1128 = vrot.lane.b32.xlu0 %v1126_v23, %s1441_s3 }
0x15ea   :  { %v875_v46 = vpop.permute.xlu0 %874 }
0x15eb   :  { %v877_v21 = vadd.f32 %v875_v46, %v1528_v10 }
0x15ed   :  { %v878_v9 = vsel %vm373_vm5, %v877_v21, 0.0 }
0x15ee   :  { %v1002_v18 = vpop.permute.xlu0 %1001 }
0x15ef   :  { %v1710_v19 = vadd.f32 %v1002_v18, %v1528_v10 }
0x15f1   :  { %v1005_v20 = vsel %vm501_vm6, %v1710_v19, 0.0 }
0x15f2   :  { %1006 = vadd.xlane.f32.xlu1 %v1005_v20 }
0x15f4   :  { %v376_v22 = vpop.xlane.xlu1 %375 }
0x15f5   :  { %v377_v26 = vmul.f32 0.03125, %v376_v22 }
0x15f7   :  { %v1721_v30 = vsub.f32 %v372_v15, %v377_v26 }
0x15f9   :  { %v379_v33 = vmul.f32 %v1721_v30, %v1721_v30 }
0x15fb   :  { %v380_v34 = vsel %vm373_vm5, %v379_v33, 0.0  ;;  %v1206_v33 = vld [vmem:[%s1780_s5] ss:$0 sm:$0xff] }
0x1608   :  { %879 = vadd.xlane.f32.xlu0 %v878_v9 }
0x160c   :  { %503 = vadd.xlane.f32.xlu0 %v502_v28  ;;  %v1205_v28 = vld [vmem:[%s1779_s4] ss:$0 sm:$0xff] }
0x1610   :  { %631 = vadd.xlane.f32.xlu0 %v630_v31 }
0x1614   :  { %237 = vadd.xlane.f32.xlu0 %v236_v32 }
0x1618   :  { %381 = vadd.xlane.f32.xlu0 %v380_v34 }
0x165b   :  { %v1129_v35 = vpop.permute.xlu0 %1128 }
0x165c   :  { %v1131_v36 = vadd.f32 %v1129_v35, %v1528_v10 }
0x165e   :  { %v1132_v6 = vsel %vm629_vm7, %v1131_v36, 0.0 }
0x165f   :  { %1133 = vadd.xlane.f32.xlu1 %v1132_v6 }
0x167b   :  { %v1007_v60 = vpop.xlane.xlu1 %1006 }
0x167c   :  { %v1008_v27 = vmul.f32 0.03125, %v1007_v60 }
0x167e   :  { %v1009_v23 = vsub.f32 %v1710_v19, %v1008_v27 }
0x1691   :  { %v880_v38 = vpop.xlane.xlu0 %879 }
0x1692   :  { %v881_v50 = vmul.f32 0.03125, %v880_v38 }
0x1694   :  { %v882_v54 = vsub.f32 %v877_v21, %v881_v50 }
0x1695   :  { %v504_v37 = vpop.xlane.xlu0 %503 }
0x1696   :  { %v505_v41 = vmul.f32 0.03125, %v504_v37  ;;  %v883_v58 = vmul.f32 %v882_v54, %v882_v54 }
0x1698   :  { %v506_v45 = vsub.f32 %v500_v7, %v505_v41  ;;  %v884_v59 = vsel %vm373_vm5, %v883_v58, 0.0  ;;  %v1010_v7 = vmul.f32 %v1009_v23, %v1009_v23 }
0x1699   :  { %v632_v39 = vpop.xlane.xlu0 %631 }
0x169a   :  { %v633_v40 = vmul.f32 0.03125, %v632_v39  ;;  %v507_v52 = vmul.f32 %v506_v45, %v506_v45  ;;  %v1011_v22 = vsel %vm501_vm6, %v1010_v7, 0.0 }
0x169c   :  { %v634_v42 = vsub.f32 %v628_v24, %v633_v40  ;;  %v508_v55 = vsel %vm501_vm6, %v507_v52, 0.0 }
0x169d   :  { %v238_v43 = vpop.xlane.xlu0 %237 }
0x169e   :  { %v240_v17 = vmul.f32 0.03125, %v238_v43  ;;  %v635_v44 = vmul.f32 %v634_v42, %v634_v42 }
0x16a0   :  { %v1730_v47 = vsub.f32 %v234_v29, %v240_v17  ;;  %v636_v48 = vsel %vm629_vm7, %v635_v44, 0.0 }
0x16a1   :  { %637 = vadd.xlane.f32.xlu0 %v636_v48  ;;  %v382_v11 = vpop.xlane.xlu0 %381 }
0x16a2   :  { %v242_v49 = vmul.f32 %v1730_v47, %v1730_v47  ;;  %v383_v12 = vmul.f32 0.03125, %v382_v11 }
0x16a4   :  { %v243_v51 = vsel %vm235_vm8, %v242_v49, 0.0  ;;  %v384_v3 = vadd.f32 1e-12, %v383_v12 }
0x16a5   :  { %244 = vadd.xlane.f32.xlu1 %v243_v51 }
0x16a9   :  { %509 = vadd.xlane.f32.xlu1 %v508_v55 }
0x16ad   :  { %755 = vadd.xlane.f32.xlu1 %v754_v56 }
0x16b1   :  { %885 = vadd.xlane.f32.xlu1 %v884_v59 }
0x16e8   :  { %v1134_v61 = vpop.xlane.xlu1 %1133 }
0x16e9   :  { %v1135_v62 = vmul.f32 0.03125, %v1134_v61 }
0x16eb   :  { %v1741_v63 = vsub.f32 %v1131_v36, %v1135_v62 }
0x16ed   :  { %v1137_v0 = vmul.f32 %v1741_v63, %v1741_v63 }
0x16ef   :  { %v1138_v10 = vsel %vm629_vm7, %v1137_v0, 0.0 }
0x16f0   :  { %1139 = vadd.xlane.f32.xlu1 %v1138_v10 }
0x172a   :  { %v638_v1 = vpop.xlane.xlu0 %637 }
0x172b   :  { %v639_v5 = vmul.f32 0.03125, %v638_v1 }
0x172d   :  { %v640_v14 = vadd.f32 1e-12, %v639_v5 }
0x172e   :  { %v1746_v8 = vpop.xlane.xlu1 %244 }
0x172f   :  { %1421 = vrsqrt.f32 %v640_v14  ;;  %v246_v10 = vmul.f32 0.03125, %v1746_v8 }
0x1732   :  { %v510_v25 = vpop.xlane.xlu1 %509 }
0x1733   :  { %v511_v13 = vmul.f32 0.03125, %v510_v25 }
0x1735   :  { %v512_v15 = vadd.f32 1e-12, %v511_v13 }
0x1736   :  { %v756_v16 = vpop.xlane.xlu1 %755 }
0x1737   :  { %1423 = vrsqrt.f32 %v512_v15  ;;  %v757_v57 = vmul.f32 0.03125, %v756_v16 }
0x1738   :  { %1425 = vrsqrt.f32 %v384_v3 }
0x1739   :  { %v1749_v46 = vsub.f32 %v753_v53, %v757_v57 }
0x173a   :  { %v886_v18 = vpop.xlane.xlu1 %885 }
0x173b   :  { %v887_v20 = vmul.f32 0.03125, %v886_v18  ;;  %v759_v4 = vmul.f32 %v1749_v46, %v1749_v46 }
0x173c   :  { %v1422_v9 = vpop.eup %1421 }
0x173d   :  { %v888_v21 = vadd.f32 1e-12, %v887_v20  ;;  %v760_v2 = vsel %vm235_vm8, %v759_v4, 0.0  ;;  %v642_v24 = vmul.f32 %v1422_v9, %v634_v42 }
0x173e   :  { %761 = vadd.xlane.f32.xlu0 %v760_v2 }
0x173f   :  { %1427 = vrsqrt.f32 %v888_v21  ;;  %v643_v32 = vmul.f32 %v1205_v28, %v642_v24 }
0x1741   :  { %v644_v6 = vadd.f32 %v1206_v33, %v643_v32 }
0x1742   :  { %1012 = vadd.xlane.f32.xlu0 %v1011_v22 }
0x1743   :  { %v1158_v40 = vrot.slane %v644_v6, 6 }
0x1744   :  { %v1424_v19 = vpop.eup %1423 }
0x1745   :  { %v514_v26 = vmul.f32 %v1424_v19, %v506_v45  ;;  %v1426_v29 = vpop.eup %1425 }
0x1746   :  { %v386_v35 = vmul.f32 %v1426_v29, %v1721_v30 }
0x1747   :  { %v515_v31 = vmul.f32 %v1205_v28, %v514_v26 }
0x1748   :  { %v387_v37 = vmul.f32 %v1205_v28, %v386_v35 }
0x1749   :  { %v516_v34 = vadd.f32 %v1206_v33, %v515_v31 }
0x174a   :  { %v388_v41 = vadd.f32 %v1206_v33, %v387_v37 }
0x174b   :  { %v1153_v36 = vrot.slane %v516_v34, 4 }
0x174c   :  { %v1428_v38 = vpop.eup %1427  ;;  %v1148_v43 = vrot.slane %v388_v41, 2 }
0x174d   :  { %1154 = vrot.lane.b32.xlu1 %v1153_v36, %s1440_s2  ;;  %v890_v39 = vmul.f32 %v1428_v38, %v882_v54 }
0x174f   :  { %v891_v42 = vmul.f32 %v1205_v28, %v890_v39 }
0x1751   :  { %1159 = vrot.lane.b32.xlu1 %v1158_v40, %s1442_s21  ;;  %v892_v17 = vadd.f32 %v1206_v33, %v891_v42 }
0x1753   :  { %v1163_v44 = vrot.slane %v892_v17, 2 }
0x1758   :  { %1149 = vrot.lane.b32.xlu0 %v1148_v43, %s1441_s3 }
0x175c   :  { %1164 = vrot.lane.b32.xlu0 %v1163_v44, %s1441_s3 }
0x1779   :  { %v1140_v30 = vpop.xlane.xlu1 %1139 }
0x177a   :  { %v1141_v45 = vmul.f32 0.03125, %v1140_v30 }
0x177c   :  { %v1142_v48 = vadd.f32 1e-12, %v1141_v45 }
0x177e   :  { %1429 = vrsqrt.f32 %v1142_v48 }
0x178b   :  { %v1430_v49 = vpop.eup %1429 }
0x178c   :  { %v1144_v50 = vmul.f32 %v1430_v49, %v1741_v63  ;;  %v247_v63 = vadd.f32 1e-12, %v246_v10 }
0x178e   :  { %v1145_v51 = vmul.f32 %v1205_v28, %v1144_v50 }
0x1790   :  { %v1146_v52 = vadd.f32 %v1206_v33, %v1145_v51 }
0x1792   :  { %v1173_v53 = vrot.slane %v1146_v52, 6 }
0x1794   :  { %1174 = vrot.lane.b32.xlu0 %v1173_v53, %s1442_s21 }
0x17bf   :  { %v1155_v13 = vpop.permute.xlu1 %1154 }
0x17c3   :  { %v1160_v57 = vpop.permute.xlu1 %1159 }
0x17c7   :  { %v762_v54 = vpop.xlane.xlu0 %761 }
0x17c8   :  { %v763_v11 = vmul.f32 0.03125, %v762_v54 }
0x17ca   :  { %v764_v1 = vadd.f32 1e-12, %v763_v11 }
0x17cb   :  { %v1013_v55 = vpop.xlane.xlu0 %1012 }
0x17cc   :  { %v1014_v56 = vmul.f32 0.03125, %v1013_v55 }
0x17ce   :  { %v1015_v58 = vadd.f32 1e-12, %v1014_v56 }
0x17cf   :  { %v1150_v15 = vpop.permute.xlu0 %1149 }
0x17d0   :  { %1431 = vrsqrt.f32 %v1015_v58 }
0x17d1   :  { %1433 = vrsqrt.f32 %v247_v63 }
0x17d2   :  { %1435 = vrsqrt.f32 %v764_v1 }
0x17d3   :  { %v1165_v18 = vpop.permute.xlu0 %1164 }
0x17dd   :  { %v1432_v59 = vpop.eup %1431 }
0x17de   :  { %v1017_v60 = vmul.f32 %v1432_v59, %v1009_v23  ;;  %v1434_v5 = vpop.eup %1433 }
0x17df   :  { %v1436_v14 = vpop.eup %1435  ;;  %v249_v12 = vmul.f32 %v1434_v5, %v1730_v47 }
0x17e0   :  { %v1018_v61 = vmul.f32 %v1205_v28, %v1017_v60  ;;  %v766_v25 = vmul.f32 %v1436_v14, %v1749_v46 }
0x17e1   :  { %v256_v27 = vmul.f32 %v1205_v28, %v249_v12 }
0x17e2   :  { %v1019_v62 = vadd.f32 %v1206_v33, %v1018_v61  ;;  %v767_v3 = vmul.f32 %v1205_v28, %v766_v25 }
0x17e3   :  { %v263_v16 = vadd.f32 %v1206_v33, %v256_v27 }
0x17e4   :  { %v1168_v0 = vrot.slane %v1019_v62, 4  ;;  %v768_v23 = vadd.f32 %v1206_v33, %v767_v3 }
0x17e5   :  { %v1177_v8 = vsel %vm42_vm1, %v263_v16, %v1150_v15 }
0x17e6   :  { %1169 = vrot.lane.b32.xlu1 %v1168_v0, %s1440_s2  ;;  %v1179_v20 = vsel %vm1178_vm9, %v1177_v8, %v1155_v13  ;;  %v1182_v4 = vsel %vm42_vm1, %v768_v23, %v1165_v18 }
0x17e7   :  { %v1181_v7 = vsel %vm1180_vm10, %v1179_v20, %v1160_v57 }
0x1806   :  { %v1175_v2 = vpop.permute.xlu0 %1174 }
0x1858   :  { %v1170_v21 = vpop.permute.xlu1 %1169 }
0x1859   :  { %v1183_v47 = vsel %vm1178_vm9, %v1182_v4, %v1170_v21 }
0x185a   :  { %v1184_v46 = vsel %vm1180_vm10, %v1183_v47, %v1175_v2 }
0x185b   :  { %v1187_v9 = vcombine.low %v1181_v7, %v1184_v46 }
0x185d   :  { %1221 = vst.sshfl [vmem:[%s1781_s6] sm:$0x33 pattern:$0x76325410] %v1187_v9 }

</bundles_post_ra>
